<compile_context>
chip_gen: v7x
topology: tpu7x:2x2x1
jax: 0.10.0
libtpu: 0.0.40
codegen_flags: <defaults>
</compile_context>

<pallas_src>
import functools
import re

import jax
import jax.numpy as jnp
from jax.experimental import pallas as pl
from jax.experimental.pallas import tpu as pltpu

GAMMA = 0.5  # unused in forward, mirrors the torch module's unused Parameter


def _tpu_generation():
    """Best-effort TPU generation from device_kind; 0 if unknown."""
    try:
        kind = jax.devices()[0].device_kind
    except Exception:
        return 0
    m = re.search(r"(\d+)", str(kind))
    return int(m.group(1)) if m else 0


def _gen_params(gen):
    """(compute_dtype, x-block byte budget, vmem_limit_bytes) per TPU generation."""
    if gen >= 7:   # v7x: bf16 EUP/VPU, but only 64 MiB physical VMEM per core
        return jnp.bfloat16, 6 * 1024 * 1024, 48 * 1024 * 1024
    if gen == 6:   # v6e: bf16 EUP/VPU, 128 MiB VMEM
        return jnp.bfloat16, 8 * 1024 * 1024, 64 * 1024 * 1024
    if gen == 5:   # v5e: no bf16 VPU/EUP -> stay f32; 128 MiB VMEM
        return jnp.float32, 8 * 1024 * 1024, 64 * 1024 * 1024
    return jnp.float32, 4 * 1024 * 1024, 32 * 1024 * 1024


def _choose_blocks(B, Lq, Ld, itemsize, budget_bytes):
    """Pick (batch_block Bt, query_block Tq).

    Small Lq: one full-extent query tile (exempt from the 8/128 rule, no padding)
    and batch-block up to the budget, but keep >= 2 batch grid steps when B >= 2.
    Large Lq: 128-multiple query tiles sized to the budget; the ragged tail block is
    masked by Pallas (garbage rows are never written back).
    """
    bytes_per_row = max(1, Ld * itemsize)
    if Lq <= 128:
        tq = Lq
        bt_budget = max(1, budget_bytes // max(1, tq * bytes_per_row))
        bt_parallel = max(1, (B + 1) // 2)      # ceil(B/2): >= 2 steps when B >= 2
        bt = max(1, min(B, bt_budget, bt_parallel))
    else:
        rows_budget = max(128, (budget_bytes // bytes_per_row) // 128 * 128)
        tq = max(128, min(rows_budget, (Lq // 128) * 128))
        bt = 1
    return bt, tq


def _gaussian_kernel_body(mu_ref, scale_ref, x_ref, o_ref, *, compute_dtype):
    # mu_ref, scale_ref : (K,) f32 in SMEM  (scale = -0.5 / sigma^2)
    # x_ref             : (Bt, Tq, Ld) block in x's native dtype
    # o_ref             : (Bt, K, Tq) f32 block, lane-dense along Tq
    x = x_ref[...]
    xc = x if x.dtype == compute_dtype else x.astype(compute_dtype)
    num_k = o_ref.shape[1]
    for k in range(num_k):                       # K is small -> static unrolled loop
        mu_k = mu_ref[k].astype(compute_dtype)   # SMEM scalar broadcast
        sc_k = scale_ref[k].astype(compute_dtype)
        d = xc - mu_k
        e = jnp.exp(d * d * sc_k)                # EUP-bound; bf16 on v6e/v7x
        s = jnp.sum(e.astype(jnp.float32), axis=-1)          # (Bt, Tq), f32 accumulate
        row = jnp.log(jnp.maximum(s, 1e-10)) * 0.01           # f32 log/clamp
        o_ref[:, k, :] = row.astype(o_ref.dtype)


def gaussian_kernel(x, w, sigma, *, compute_dtype=None):
    """x: (B, Lq, Ld); w, sigma: (K, 1, 1, 1). Returns (B, K, Lq) f32."""
    B, Lq, Ld = x.shape
    K = w.shape[0]

    # torch: w.transpose(0,3).reshape(1,1,-1,K) with (K,1,1,1) -> mu[k] = w[k,0,0,0]
    mu = w.reshape(K).astype(jnp.float32)
    scale = -0.5 / (sigma.reshape(K).astype(jnp.float32) ** 2)

    gen = _tpu_generation()
    auto_dtype, budget, vmem_limit = _gen_params(gen)
    if compute_dtype is None:
        compute_dtype = auto_dtype

    bt, tq = _choose_blocks(B, Lq, Ld, x.dtype.itemsize, budget)
    grid = (pl.cdiv(B, bt), pl.cdiv(Lq, tq))

    kernel = functools.partial(_gaussian_kernel_body, compute_dtype=compute_dtype)
    return pl.pallas_call(
        kernel,
        out_shape=jax.ShapeDtypeStruct((B, K, Lq), jnp.float32),
        grid_spec=pltpu.PrefetchScalarGridSpec(
            num_scalar_prefetch=0,
            grid=grid,
            in_specs=[
                pl.BlockSpec(memory_space=pltpu.MemorySpace.SMEM),     # mu
                pl.BlockSpec(memory_space=pltpu.MemorySpace.SMEM),     # scale
                pl.BlockSpec((bt, tq, Ld), lambda b, q: (b, q, 0)),    # x (native dtype)
            ],
            out_specs=pl.BlockSpec((bt, K, tq), lambda b, q: (b, 0, q)),
        ),
        compiler_params=pltpu.CompilerParams(
            dimension_semantics=("parallel", "parallel"),
            vmem_limit_bytes=vmem_limit,
        ),
    )(mu, scale, x)


def _reference(x, w, sigma):
    # Pure-JAX reference mirroring the torch code line-by-line.
    K = w.shape[0]
    w_r = jnp.transpose(w, (3, 1, 2, 0)).reshape(1, 1, -1, K)
    s_r = jnp.transpose(sigma, (3, 1, 2, 0)).reshape(1, 1, -1, K)
    l2 = x[..., None] - w_r
    out = jnp.exp(-(l2 ** 2) / s_r ** 2 / 2)
    out = jnp.log(jnp.maximum(out.sum(axis=2), 1e-10)) * 0.01
    return jnp.transpose(out, (0, 2, 1))


if __name__ == "__main__":
    key = jax.random.PRNGKey(0)
    k1, k2, k3 = jax.random.split(key, 3)

    K = 4
    # Deterministic kernel parameters: mu evenly spaced in [-1, 1], fixed sigma.
    w = jnp.linspace(-1.0, 1.0, K, dtype=jnp.float32).reshape(K, 1, 1, 1)
    sigma = jnp.full((K, 1, 1, 1), 0.3, dtype=jnp.float32)

    cases = [
        jnp.tanh(jax.random.normal(k1, (2, 8, 16), dtype=jnp.float32)),    # exact tiles
        jnp.tanh(jax.random.normal(k2, (2, 10, 16), dtype=jnp.float32)),   # Lq not mult of 8
        jnp.tanh(jax.random.normal(k3, (4, 8, 16), dtype=jnp.float32)),    # batch blocking Bt=2
    ]

    for i, x in enumerate(cases, 1):
        ref = _reference(x, w, sigma)

        # Auto path (bf16 exp chain on v6e/v7x) -> loose tolerance for bf16 drift.
        out = jax.block_until_ready(gaussian_kernel(x, w, sigma))
        assert out.shape == ref.shape, (i, out.shape, ref.shape)
        assert jnp.allclose(out, ref, atol=5e-3, rtol=1e-3), f"case {i}: auto-dtype mismatch"

        # Forced-f32 path validates exact semantics to tight tolerance on any chip.
        out32 = jax.block_until_ready(gaussian_kernel(x, w, sigma, compute_dtype=jnp.float32))
        assert jnp.allclose(out32, ref, atol=1e-5, rtol=1e-5), f"case {i}: f32 mismatch"

    print("KERNEL_OK")
</pallas_src>

<mosaic_0001>
module attributes {stable_mosaic.version = 11 : i64} {
  func.func @_gaussian_kernel_body(%arg0: i32, %arg1: i32, %arg2: memref<4xf32, #tpu.memory_space<smem>>, %arg3: memref<4xf32, #tpu.memory_space<smem>>, %arg4: memref<1x8x16xf32, #tpu.memory_space<vmem>>, %arg5: memref<1x4x8xf32, #tpu.memory_space<vmem>>) attributes {dimension_semantics = [#tpu.dimension_semantics<parallel>, #tpu.dimension_semantics<parallel>], iteration_bounds = array<i64: 2, 1>, scalar_prefetch = 0 : i64, scratch_operands = 0 : i64, tpu.core_type = #tpu.core_type<tc>, window_params = [{transform_indices = @transform_0, window_bounds = array<i64: 4>}, {transform_indices = @transform_1, window_bounds = array<i64: 4>}, {transform_indices = @transform_2, window_bounds = array<i64: 1, 8, 16>}, {transform_indices = @transform_3, window_bounds = array<i64: 1, 4, 8>}]} {
    %c0 = arith.constant 0 : index
    %c0_0 = arith.constant 0 : index
    %c0_1 = arith.constant 0 : index
    %0 = vector.load %arg4[%c0, %c0_0, %c0_1] : memref<1x8x16xf32, #tpu.memory_space<vmem>>, vector<1x8x16xf32>
    %c0_2 = arith.constant 0 : index
    %1 = memref.load %arg2[%c0_2] : memref<4xf32, #tpu.memory_space<smem>>
    %c0_3 = arith.constant 0 : index
    %2 = memref.load %arg3[%c0_3] : memref<4xf32, #tpu.memory_space<smem>>
    %3 = vector.broadcast %1 : f32 to vector<1x8x16xf32>
    %4 = arith.subf %0, %3 : vector<1x8x16xf32>
    %5 = arith.mulf %4, %4 : vector<1x8x16xf32>
    %6 = vector.broadcast %2 : f32 to vector<1x8x16xf32>
    %7 = arith.mulf %5, %6 : vector<1x8x16xf32>
    %8 = math.exp %7 : vector<1x8x16xf32>
    %cst = arith.constant dense<0.000000e+00> : vector<1x8xf32>
    %9 = vector.multi_reduction <add>, %8, %cst [2] : vector<1x8x16xf32> to vector<1x8xf32>
    %cst_4 = arith.constant 1.000000e-10 : f32
    %10 = vector.broadcast %cst_4 : f32 to vector<1x8xf32>
    %11 = arith.maximumf %9, %10 : vector<1x8xf32>
    %12 = math.log %11 : vector<1x8xf32>
    %cst_5 = arith.constant 0.00999999977 : f32
    %13 = vector.broadcast %cst_5 : f32 to vector<1x8xf32>
    %14 = arith.mulf %12, %13 : vector<1x8xf32>
    %c0_6 = arith.constant 0 : index
    %c0_7 = arith.constant 0 : index
    %c0_8 = arith.constant 0 : index
    %15 = vector.load %arg5[%c0_6, %c0_7, %c0_8] : memref<1x4x8xf32, #tpu.memory_space<vmem>>, vector<1x1x8xf32>
    %16 = vector.shape_cast %15 : vector<1x1x8xf32> to vector<1x8xf32>
    %17 = vector.shape_cast %14 : vector<1x8xf32> to vector<1x1x8xf32>
    tpu.vector_store %arg5[%c0_6, %c0_7, %c0_8], %17 {strides = array<i32>} : memref<1x4x8xf32, #tpu.memory_space<vmem>>, vector<1x1x8xf32>,
    %c1 = arith.constant 1 : index
    %18 = memref.load %arg2[%c1] : memref<4xf32, #tpu.memory_space<smem>>
    %c1_9 = arith.constant 1 : index
    %19 = memref.load %arg3[%c1_9] : memref<4xf32, #tpu.memory_space<smem>>
    %20 = vector.broadcast %18 : f32 to vector<1x8x16xf32>
    %21 = arith.subf %0, %20 : vector<1x8x16xf32>
    %22 = arith.mulf %21, %21 : vector<1x8x16xf32>
    %23 = vector.broadcast %19 : f32 to vector<1x8x16xf32>
    %24 = arith.mulf %22, %23 : vector<1x8x16xf32>
    %25 = math.exp %24 : vector<1x8x16xf32>
    %cst_10 = arith.constant dense<0.000000e+00> : vector<1x8xf32>
    %26 = vector.multi_reduction <add>, %25, %cst_10 [2] : vector<1x8x16xf32> to vector<1x8xf32>
    %cst_11 = arith.constant 1.000000e-10 : f32
    %27 = vector.broadcast %cst_11 : f32 to vector<1x8xf32>
    %28 = arith.maximumf %26, %27 : vector<1x8xf32>
    %29 = math.log %28 : vector<1x8xf32>
    %cst_12 = arith.constant 0.00999999977 : f32
    %30 = vector.broadcast %cst_12 : f32 to vector<1x8xf32>
    %31 = arith.mulf %29, %30 : vector<1x8xf32>
    %c0_13 = arith.constant 0 : index
    %c1_14 = arith.constant 1 : index
    %c0_15 = arith.constant 0 : index
    %32 = vector.load %arg5[%c0_13, %c1_14, %c0_15] : memref<1x4x8xf32, #tpu.memory_space<vmem>>, vector<1x1x8xf32>
    %33 = vector.shape_cast %32 : vector<1x1x8xf32> to vector<1x8xf32>
    %34 = vector.shape_cast %31 : vector<1x8xf32> to vector<1x1x8xf32>
    tpu.vector_store %arg5[%c0_13, %c1_14, %c0_15], %34 {strides = array<i32>} : memref<1x4x8xf32, #tpu.memory_space<vmem>>, vector<1x1x8xf32>,
    %c2 = arith.constant 2 : index
    %35 = memref.load %arg2[%c2] : memref<4xf32, #tpu.memory_space<smem>>
    %c2_16 = arith.constant 2 : index
    %36 = memref.load %arg3[%c2_16] : memref<4xf32, #tpu.memory_space<smem>>
    %37 = vector.broadcast %35 : f32 to vector<1x8x16xf32>
    %38 = arith.subf %0, %37 : vector<1x8x16xf32>
    %39 = arith.mulf %38, %38 : vector<1x8x16xf32>
    %40 = vector.broadcast %36 : f32 to vector<1x8x16xf32>
    %41 = arith.mulf %39, %40 : vector<1x8x16xf32>
    %42 = math.exp %41 : vector<1x8x16xf32>
    %cst_17 = arith.constant dense<0.000000e+00> : vector<1x8xf32>
    %43 = vector.multi_reduction <add>, %42, %cst_17 [2] : vector<1x8x16xf32> to vector<1x8xf32>
    %cst_18 = arith.constant 1.000000e-10 : f32
    %44 = vector.broadcast %cst_18 : f32 to vector<1x8xf32>
    %45 = arith.maximumf %43, %44 : vector<1x8xf32>
    %46 = math.log %45 : vector<1x8xf32>
    %cst_19 = arith.constant 0.00999999977 : f32
    %47 = vector.broadcast %cst_19 : f32 to vector<1x8xf32>
    %48 = arith.mulf %46, %47 : vector<1x8xf32>
    %c0_20 = arith.constant 0 : index
    %c2_21 = arith.constant 2 : index
    %c0_22 = arith.constant 0 : index
    %49 = vector.load %arg5[%c0_20, %c2_21, %c0_22] : memref<1x4x8xf32, #tpu.memory_space<vmem>>, vector<1x1x8xf32>
    %50 = vector.shape_cast %49 : vector<1x1x8xf32> to vector<1x8xf32>
    %51 = vector.shape_cast %48 : vector<1x8xf32> to vector<1x1x8xf32>
    tpu.vector_store %arg5[%c0_20, %c2_21, %c0_22], %51 {strides = array<i32>} : memref<1x4x8xf32, #tpu.memory_space<vmem>>, vector<1x1x8xf32>,
    %c3 = arith.constant 3 : index
    %52 = memref.load %arg2[%c3] : memref<4xf32, #tpu.memory_space<smem>>
    %c3_23 = arith.constant 3 : index
    %53 = memref.load %arg3[%c3_23] : memref<4xf32, #tpu.memory_space<smem>>
    %54 = vector.broadcast %52 : f32 to vector<1x8x16xf32>
    %55 = arith.subf %0, %54 : vector<1x8x16xf32>
    %56 = arith.mulf %55, %55 : vector<1x8x16xf32>
    %57 = vector.broadcast %53 : f32 to vector<1x8x16xf32>
    %58 = arith.mulf %56, %57 : vector<1x8x16xf32>
    %59 = math.exp %58 : vector<1x8x16xf32>
    %cst_24 = arith.constant dense<0.000000e+00> : vector<1x8xf32>
    %60 = vector.multi_reduction <add>, %59, %cst_24 [2] : vector<1x8x16xf32> to vector<1x8xf32>
    %cst_25 = arith.constant 1.000000e-10 : f32
    %61 = vector.broadcast %cst_25 : f32 to vector<1x8xf32>
    %62 = arith.maximumf %60, %61 : vector<1x8xf32>
    %63 = math.log %62 : vector<1x8xf32>
    %cst_26 = arith.constant 0.00999999977 : f32
    %64 = vector.broadcast %cst_26 : f32 to vector<1x8xf32>
    %65 = arith.mulf %63, %64 : vector<1x8xf32>
    %c0_27 = arith.constant 0 : index
    %c3_28 = arith.constant 3 : index
    %c0_29 = arith.constant 0 : index
    %66 = vector.load %arg5[%c0_27, %c3_28, %c0_29] : memref<1x4x8xf32, #tpu.memory_space<vmem>>, vector<1x1x8xf32>
    %67 = vector.shape_cast %66 : vector<1x1x8xf32> to vector<1x8xf32>
    %68 = vector.shape_cast %65 : vector<1x8xf32> to vector<1x1x8xf32>
    tpu.vector_store %arg5[%c0_27, %c3_28, %c0_29], %68 {strides = array<i32>} : memref<1x4x8xf32, #tpu.memory_space<vmem>>, vector<1x1x8xf32>,
    return
  }
  func.func @transform_0(%arg0: i32, %arg1: i32) -> i32 {
    %c0_i32 = arith.constant 0 : i32
    %c0_i32_0 = arith.constant 0 : i32
    return %c0_i32 : i32
  }
  func.func @transform_1(%arg0: i32, %arg1: i32) -> i32 {
    %c0_i32 = arith.constant 0 : i32
    %c0_i32_0 = arith.constant 0 : i32
    return %c0_i32 : i32
  }
  func.func @transform_2(%arg0: i32, %arg1: i32) -> (i32, i32, i32) {
    %c0_i32 = arith.constant 0 : i32
    %c0_i32_0 = arith.constant 0 : i32
    return %arg0, %arg1, %c0_i32 : i32, i32, i32
  }
  func.func @transform_3(%arg0: i32, %arg1: i32) -> (i32, i32, i32) {
    %c0_i32 = arith.constant 0 : i32
    %c0_i32_0 = arith.constant 0 : i32
    return %arg0, %c0_i32, %arg1 : i32, i32, i32
  }
}

</mosaic_0001>

<bundles_post_ra>
// kernel: tpu_custom_call.1
= control target key start
LH: loop header
LB: loop body
LE: loop exit
PB: predicated region body
PF: predicated region fallthrough
CT: control target
= control target key end

     0   :  { %8 = vsyncpa [#allocation5], 0  ;;  %s968_s0 = inlined_call_operand.hbm [shape: f32[4], index: 0, kind: input, shape index: {}]   ;;  %s969_s1 = inlined_call_operand.vmem [shape: f32[4], index: 1, kind: input, shape index: {}]   ;;  %s970_s2 = inlined_call_operand.hbm [shape: f32[2,8,16], index: 2, kind: input, shape index: {}]   ;;  %s971_s3 = inlined_call_operand.hbm [shape: f32[2,4,8], index: 3, kind: output, shape index: {}]  }
   0x1   :  { %9 = vsyncpa [#allocation6], 0 }
   0x2   :  { %10 = vsyncpa [#allocation3], 0 }
   0x3   :  { %12 = vsyncpa [#allocation3 + $0x1], 0 }
   0x4   :  { %13 = vsyncpa [#allocation4], 0 }
   0x5   :  { %15 = vsyncpa [#allocation4 + $0x1], 0  ;;  %s740_s12 = smov 0   ;;  %s742_s13 = smov 0  }
   0x6   :  { %s744_s14 = smov 0   ;;  %s746_s15 = smov 0  }
   0x7   :  { %s748_s16 = smov 0   ;;  %s750_s17 = smov 0  }
   0x8 LB: > { %s444_s18 = sadd.s32 4294967295, %s714_s17   ;;  %s445_s19 = sadd.s32 4294967294, %s714_s17   ;;  %s714_s17 = sphi %s750_s17, %s21_s17   ;;  %s710_s16 = sphi %s748_s16, %s994_s16   ;;  %s706_s15 = sphi %s746_s15, %s993_s15   ;;  %s702_s14 = sphi %s744_s14, %s992_s14   ;;  %s698_s13 = sphi %s742_s13, %s991_s13   ;;  %s694_s12 = sphi %s740_s12, %s990_s12  }
   0x9   : > { %p97_p0 = scmp.ne.s32.totalorder %s698_s13, %s694_s12  ;;  %p774_p1 = scmp.eq.s32.totalorder %s444_s18, 0 }
   0xa   : > { %p778_p2 = scmp.eq.s32.totalorder %s444_s18, 1  ;;  %p129_p3 = scmp.eq.s32.totalorder %s445_s19, 1 }
   0xb   : > { %s976_s20 = scalar_select %p774_p1, 1, 0 }
   0xc   : > { %p784_p4 = por %p774_p1, %p97_p0  ;;  %p446_p5 = scmp.ge.s32.totalorder %s714_s17, 1 }
   0xd   : > { %p789_p6 = por %p129_p3, %p97_p0  ;;  %p136_p7 = scmp.lt.s32.totalorder %s714_s17, 3 }
   0xe   : > { %s978_s22 = scalar_select %p784_p4, 1, 0 }
   0xf   : > { %s979_s23 = scalar_select %p789_p6, 1, 0 }
  0x10   : > { %p794_p8 = pnand %p446_p5, %p136_p7  ;;  %s158_s27 = sshll.u32 %s969_s1, 4  ;;  %s159_s27 = int_to_ptr.vmem [resolvable:$true] %s158_s27 }
  0x11   : > { %s33_s29 = sadd.s32 1, %s710_s16  ;;  %s566_s6 = scalar_lea.hbm %s968_s0, 16 }
  0x12   : > { %s980_s24 = scalar_select %p794_p8, 1, 0 }
  0x13   : > { %p479_p10 = pneg %p794_p8  ;;  %p811_p12 = scmp.ge.s32.totalorder %s33_s29, 2 }
  0x14   : > { %p567_p13 = scmp.ne.s32.totalorder %s968_s0, %s566_s6  ;;  %p573_p7 = scmp.lt.u32.totalorder %s566_s6, %s968_s0 }
  0x15   : > { %p806_p11 = pnand %p479_p10, %p774_p1 }
  0x17   : > { %p568_p0 = pneg %p806_p11 }
  0x19   : > { %p569_p3 = pnand %p568_p0, %p567_p13 }
  0x1b   : > { %p570_p5 = pneg %p569_p3 }
  0x1d   : > { %p575_p10 = pnand %p573_p7, %p570_p5 }
  0x1f   : > { %578 = shalt.err (!%p575_p10)
}
  0x20   : > { %s716_s11 = smov [#allocation2]   ;;  %s579_s25 = scalar_lea.vmem %s159_s27, 16 }
  0x21   : > { %482 = dma.hbm_to_smem (!%p806_p11), %s968_s0, 16, %s716_s11, [#allocation5]  }
  0x22   : > { %p580_p9 = scmp.ne.s32.totalorder %s159_s27, %s579_s25  ;;  %p587_p1 = scmp.lt.s32.totalorder %s159_s27, %s159_s27 }
  0x23   : > { %p588_p13 = scmp.lt.s32.totalorder %s579_s25, %s579_s25 }
  0x24   : > { %p582_p6 = pnand %p580_p9, %p568_p0 }
  0x25   : > { %p589_p3 = por %p588_p13, %p587_p1 }
  0x26   : > { %p583_p4 = pneg %p582_p6 }
  0x28   : > { %p590_p8 = pnand %p589_p3, %p583_p4 }
  0x2a   : > { %593 = shalt.err (!%p590_p8)
}
  0x2b   : > { %s717_s26 = smov [#allocation7]   ;;  %s996_s29 = smov (%p811_p12, %s33_s29), 0 }
  0x2c   : > { %485 = dma.vmem_to_smem (!%p806_p11), %s159_s27, 16, %s717_s26, [#allocation6]  }
  0x2d   : > { %s84_s4 = sadd.s32 1, %s702_s14  ;;  %p91_p1 = scmp.ne.s32.totalorder %s702_s14, %s698_s13 }
  0x2e   : > { %s79_s5 = ssub.s32 %s710_s16, %s996_s29  ;;  %p92_p4 = scmp.eq.s32.totalorder %s714_s17, 0 }
  0x2f   : > { %p82_p6 = scmp.eq.s32.totalorder %s79_s5, 0  ;;  %p845_p8 = por %p778_p2, %p91_p1 }
  0x30   : > { %p93_p9 = por %p92_p4, %p91_p1  ;;  %p496_p0 = scmp.lt.s32.totalorder %s714_s17, 2 }
  0x31   : > { %s851_s6 = scalar_select %p82_p6, %s702_s14, %s84_s4  }
  0x32   : > { %s169_s7 = sand.u32 1, %s702_s14   ;;  %s451_s27 = sshll.u32 %s710_s16, 7 }
  0x33   : > { %s450_s30 = sshll.u32 %s169_s7, 3  ;;  %s858_s10 = scalar_lea.hbm %s970_s2, %s451_s27 }
  0x34   : > { %s173_s21 = scalar_lea.vmem [#allocation8], %s450_s30  ;;  %p860_p2 = pnand %p496_p0, %p93_p9 }
  0x35   : > { %s181_s11 = sshll.u32 %s173_s21, 4  ;;  %s170_s19 = scalar_lea.sflag [#allocation3], %s169_s7  ;;  %s864_s11 = int_to_ptr.vmem [resolvable:$true] %s181_s11 }
  0x36   : > { %s594_s25 = scalar_lea.hbm %s858_s10, 128  ;;  %p596_p12 = pneg %p860_p2 }
  0x37   : > { %p595_p11 = scmp.ne.s32.totalorder %s858_s10, %s594_s25  ;;  %s599_s5 = scalar_lea.hbm %s970_s2, 256 }
  0x38   : > { %p600_p10 = scmp.lt.u32.totalorder %s858_s10, %s970_s2  ;;  %p601_p13 = scmp.lt.u32.totalorder %s599_s5, %s594_s25 }
  0x39   : > { %p597_p5 = pnand %p596_p12, %p595_p11  ;;  %p603_p1 = scmp.lt.u32.totalorder %s594_s25, %s858_s10 }
  0x3a   : > { %p602_p3 = por %p601_p13, %p600_p10 }
  0x3b   : > { %p598_p7 = pneg %p597_p5 }
  0x3c   : > { %p604_p4 = por %p603_p1, %p602_p3 }
  0x3e   : > { %p605_p6 = pnand %p604_p4, %p598_p7 }
  0x40   : > { %608 = shalt.err (!%p605_p6)
}
  0x41   : > { %s609_s7 = scalar_lea.vmem %s864_s11, 128  ;;  %s718_s8 = smov [#allocation8]  }
  0x42   : > { %p610_p9 = scmp.ne.s32.totalorder %s864_s11, %s609_s7  ;;  %s614_s9 = sshll.u32 %s718_s8, 4  ;;  %s615_s9 = int_to_ptr.vmem [resolvable:$false] %s614_s9 }
  0x43   : > { %s616_s21 = scalar_lea.vmem %s615_s9, 256  ;;  %p617_p5 = scmp.lt.s32.totalorder %s864_s11, %s615_s9 }
  0x44   : > { %p612_p0 = pnand %p610_p9, %p596_p12  ;;  %p618_p10 = scmp.lt.s32.totalorder %s616_s21, %s609_s7 }
  0x46   : > { %p613_p11 = pneg %p612_p0  ;;  %p619_p13 = por %p618_p10, %p617_p5 }
  0x48   : > { %p620_p3 = pnand %p619_p13, %p613_p11 }
  0x4a   : > { %623 = shalt.err (!%p620_p3)
}
  0x4b   : > { %489 = dma.hbm_to_vmem [thread:$0]  (!%p860_p2), %s858_s10, 128, %s864_s11, %s170_s19  }
  0x4c   : > { %p985_p7 = scmp.ne.s32.totalorder %s980_s24, 0 }
  0x4d   : > { %p986_p12 = scmp.ne.s32.totalorder (!%p985_p7), %s976_s20, 0 }
  0x4e   : > { %190 = sbr.rel (%p985_p7) target bundleno = 301 (0x12d), region = 32 }
  0x55   : > { %677 = dma.done.wait (%p986_p12), [#allocation5], 16  }
  0x56   : > { %679 = vsyncadd (%p986_p12), [#allocation5], 4294967280 }
  0x57   : > { %681 = dma.done.wait (%p986_p12), [#allocation6], 16  }
  0x58   : > { %683 = vsyncadd (%p986_p12), [#allocation6], 4294967280  ;;  %s902_s18 = sand.u32 1, %s698_s13   ;;  %p987_p2 = scmp.ne.s32.totalorder %s978_s22, 0 }
  0x59   : > { %s455_s24 = sshll.u32 %s902_s18, 3  ;;  %s201_s10 = scalar_lea.sflag [#allocation3], %s902_s18 }
  0x5a   : > { %s204_s11 = scalar_lea.vmem [#allocation8], %s455_s24 }
  0x5b   : > { %685 = dma.done.wait (%p987_p2), %s201_s10, 128  }
  0x5c   : > { %687 = vsyncadd (%p987_p2), %s201_s10, 4294967168 }
  0x5d   : > { %209 = sfence }
  0x5e   : > { %s459_s19 = sld [smem:[#allocation2 + $0x2]]  ;;  %s229_s26 = sld [smem:[#allocation2]]  ;;  %v228_v0 = vld [vmem:[%s204_s11] sm:$0xff]  ;;  %vm238_vm0 = vcmask 130048   ;;  %v247_v40 = vlaneseq  ;;  %vm254_vm1 = vcmask 57344  }
  0x5f   : > { %s460_s25 = sld [smem:[#allocation7 + $0x2]]  ;;  %s230_s20 = sld [smem:[#allocation7]] }
  0x60   : > { %s461_s4 = sld [smem:[#allocation2 + $0x3]]  ;;  %s457_s27 = sld [smem:[#allocation2 + $0x1]]  ;;  %v248_v42 = vand.u32 127, %v247_v40  ;;  %v250_v43 = vshrl.u32 %v247_v40, 7 }
  0x61   : > { %s462_s5 = sld [smem:[#allocation7 + $0x3]]  ;;  %s458_s30 = sld [smem:[#allocation7 + $0x1]] }
  0x62   : > { %v251_v46 = vsub.s32 %v248_v42, %v250_v43  ;;  %s456_s22 = sshll.u32 %s902_s18, 2  ;;  %s464_s8 = sshll.u32 %s706_s15, 6 }
  0x63   : > { %s227_s7 = scalar_lea.vmem [#allocation9], %s456_s22  ;;  %s917_s10 = scalar_lea.hbm %s971_s3, %s464_s8 }
  0x64   : > { %v281_v1 = vstv %s459_s19  ;;  %v231_v3 = vstv %s229_s26  ;;  %s340_s9 = sshll.u32 %s227_s7, 4  ;;  %s326_s15 = scalar_lea.sflag [#allocation4], %s902_s18  ;;  %s919_s9 = int_to_ptr.vmem [resolvable:$true] %s340_s9 }
  0x65   : > { %v282_v2 = vsub.f32 %v228_v0, %v281_v1  ;;  %v284_v4 = vstv %s460_s25  ;;  %v232_v5 = vsub.f32 %v228_v0, %v231_v3  ;;  %v234_v8 = vstv %s230_s20  ;;  %s624_s11 = scalar_lea.vmem %s919_s9, 64  ;;  %s719_s19 = smov [#allocation9]  }
  0x66   : > { %v304_v6 = vstv %s461_s4  ;;  %v258_v10 = vstv %s457_s27  ;;  %p625_p1 = scmp.ne.s32.totalorder %s919_s9, %s624_s11  ;;  %s628_s25 = sshll.u32 %s719_s19, 4  ;;  %s629_s25 = int_to_ptr.vmem [resolvable:$false] %s628_s25 }
  0x67   : > { %v283_v7 = vmul.f32 %v282_v2, %v282_v2  ;;  %v305_v9 = vsub.f32 %v228_v0, %v304_v6  ;;  %v233_v11 = vmul.f32 %v232_v5, %v232_v5  ;;  %v307_v12 = vstv %s462_s5  ;;  %s630_s26 = scalar_lea.vmem %s629_s25, 128  ;;  %p631_p9 = scmp.lt.s32.totalorder %s919_s9, %s629_s25 }
  0x68   : > { %v259_v13 = vsub.f32 %v228_v0, %v258_v10  ;;  %v261_v16 = vstv %s458_s30  ;;  %p626_p4 = pnand %p625_p1, %p845_p8  ;;  %p632_p0 = scmp.lt.s32.totalorder %s630_s26, %s624_s11 }
  0x69   : > { %v285_v14 = vmul.f32 %v284_v4, %v283_v7  ;;  %v306_v15 = vmul.f32 %v305_v9, %v305_v9  ;;  %v235_v17 = vmul.f32 %v234_v8, %v233_v11 }
  0x6a   : > { %v260_v18 = vmul.f32 %v259_v13, %v259_v13  ;;  %p627_p6 = pneg %p626_p4  ;;  %p633_p11 = por %p632_p0, %p631_p9 }
  0x6b   : > { %v286_v19 = vmul.f32 1.442695, %v285_v14  ;;  %v308_v20 = vmul.f32 %v307_v12, %v306_v15  ;;  %v236_v21 = vmul.f32 1.442695, %v235_v17 }
  0x6c   : > { %v262_v22 = vmul.f32 %v261_v16, %v260_v18  ;;  %p634_p5 = pnand %p633_p11, %p627_p6 }
  0x6d   : > { %550 = vpow2.f32 %v286_v19  ;;  %v309_v23 = vmul.f32 1.442695, %v308_v20 }
  0x6e   : > { %552 = vpow2.f32 %v236_v21  ;;  %v263_v24 = vmul.f32 1.442695, %v262_v22 }
  0x6f   : > { %554 = vpow2.f32 %v309_v23 }
  0x70   : > { %556 = vpow2.f32 %v263_v24 }
  0x77   : > { %v551_v25 = vpop.eup %550 }
  0x78   : > { %v553_v26 = vpop.eup %552  ;;  %v288_v27 = vsel %vm238_vm0, %v551_v25, 0.0 }
  0x79   : > { %v555_v28 = vpop.eup %554  ;;  %289 = vadd.xlane.f32.xlu1 %v288_v27  ;;  %v239_v29 = vsel %vm238_vm0, %v553_v26, 0.0 }
  0x7a   : > { %v557_v30 = vpop.eup %556  ;;  %240 = vadd.xlane.f32.xlu0 %v239_v29  ;;  %v311_v31 = vsel %vm238_vm0, %v555_v28, 0.0 }
  0x7b   : > { %v265_v32 = vsel %vm238_vm0, %v557_v30, 0.0 }
  0x7d   : > { %312 = vadd.xlane.f32.xlu1 %v311_v31 }
  0x7e   : > { %266 = vadd.xlane.f32.xlu0 %v265_v32 }
 0x106   : > { %v290_v33 = vpop.xlane.xlu1 %289 }
 0x107   : > { %v291_v34 = vmax.f32 %v290_v33, 1e-10  ;;  %v241_v35 = vpop.xlane.xlu0 %240 }
 0x108   : > { %v242_v36 = vmax.f32 %v241_v35, 1e-10 }
 0x109   : > { %558 = vlog2.f32 %v291_v34 }
 0x10a   : > { %560 = vlog2.f32 %v242_v36  ;;  %v313_v37 = vpop.xlane.xlu1 %312 }
 0x10b   : > { %v314_v38 = vmax.f32 %v313_v37, 1e-10  ;;  %v267_v39 = vpop.xlane.xlu0 %266 }
 0x10c   : > { %v268_v41 = vmax.f32 %v267_v39, 1e-10 }
 0x10d   : > { %562 = vlog2.f32 %v314_v38 }
 0x10e   : > { %564 = vlog2.f32 %v268_v41 }
 0x113   : > { %v559_v44 = vpop.eup %558 }
 0x114   : > { %v561_v45 = vpop.eup %560  ;;  %v293_v47 = vmul.f32 0.6931472, %v559_v44 }
 0x115   : > { %v244_v48 = vmul.f32 0.6931472, %v561_v45 }
 0x116   : > { %v294_v49 = vmul.f32 0.01, %v293_v47 }
 0x117   : > { %v563_v50 = vpop.eup %562  ;;  %v245_v51 = vmul.f32 0.01, %v244_v48 }
 0x118   : > { %v565_v52 = vpop.eup %564  ;;  %v299_v53 = vrot.slane %v294_v49, %v251_v46  ;;  %v316_v54 = vmul.f32 0.6931472, %v563_v50 }
 0x119   : > { %v252_v55 = vrot.slane %v245_v51, %v251_v46  ;;  %v270_v56 = vmul.f32 0.6931472, %v565_v52 }
 0x11a   : > { %301 = vst.msk [vmem:[%s227_s7 + $0x2] sm:$0x1] %vm254_vm1, %v299_v53  ;;  %v317_v57 = vmul.f32 0.01, %v316_v54 }
 0x11b   : > { %255 = vst.msk [vmem:[%s227_s7] sm:$0x1] %vm254_vm1, %v252_v55  ;;  %v271_v58 = vmul.f32 0.01, %v270_v56 }
 0x11c   : > { %v322_v59 = vrot.slane %v317_v57, %v251_v46 }
 0x11d   : > { %v276_v60 = vrot.slane %v271_v58, %v251_v46 }
 0x11e   : > { %324 = vst.msk [vmem:[%s227_s7 + $0x3] sm:$0x1] %vm254_vm1, %v322_v59 }
 0x11f   : > { %278 = vst.msk [vmem:[%s227_s7 + $0x1] sm:$0x1] %vm254_vm1, %v276_v60 }
 0x120   : > { %637 = shalt.err (!%p634_p5)
}
 0x121   : > { %s638_s18 = scalar_lea.hbm %s917_s10, 64  ;;  %s642_s5 = scalar_lea.hbm %s971_s3, 128 }
 0x122   : > { %p639_p10 = scmp.ne.s32.totalorder %s917_s10, %s638_s18  ;;  %p643_p7 = scmp.lt.u32.totalorder %s917_s10, %s971_s3 }
 0x123   : > { %p644_p12 = scmp.lt.u32.totalorder %s642_s5, %s638_s18  ;;  %p646_p1 = scmp.lt.u32.totalorder %s638_s18, %s917_s10 }
 0x124   : > { %p640_p13 = pnand %p639_p10, %p845_p8 }
 0x125   : > { %p645_p2 = por %p644_p12, %p643_p7 }
 0x126   : > { %p641_p3 = pneg %p640_p13 }
 0x127   : > { %p647_p4 = por %p646_p1, %p645_p2 }
 0x129   : > { %p648_p6 = pnand %p647_p4, %p641_p3 }
 0x12b   : > { %651 = shalt.err (!%p648_p6)
}
 0x12c   : > { %477 = dma.vmem_to_hbm [thread:$0]  (%p845_p8), %s919_s9, 64, %s917_s10, %s326_s15  }
 0x12d PF: > { %s352_s22 = sand.u32 1, %s694_s12   ;;  %p988_p9 = scmp.ne.s32.totalorder %s979_s23, 0 }
 0x12e   : > { %p989_p0 = scmp.ge.s32.totalorder %s714_s17, 2  ;;  %s353_s7 = scalar_lea.sflag [#allocation4], %s352_s22 }
 0x130   : > { %p491_p11 = pnand %p989_p0, %p988_p9 }
 0x132   : > { %689 = dma.done.wait (!%p491_p11), %s353_s7, 64  }
 0x133   : > { %691 = vsyncadd (!%p491_p11), %s353_s7, 4294967232  ;;  %s21_s17 = sadd.s32 1, %s714_s17   ;;  %s990_s12 = smov %s698_s13 }
 0x134   : > { %p18_p5 = scmp.ge.s32.totalorder %s21_s17, 4   ;;  %s991_s13 = smov %s702_s14 }
 0x135   : > { %s992_s14 = smov %s851_s6  ;;  %s993_s15 = smov %s710_s16 }
 0x136   : > { %s994_s16 = smov %s996_s29  ;;  %20 = sbr.rel (!%p18_p5) target bundleno = 8 (0x8), region = 87 }
 0x13d   :  { %358 = vsyncpa [#allocation3], 1 }
 0x13e   :  { %360 = vsyncpa [#allocation3 + $0x1], 1 }
 0x13f   :  { %361 = vsyncpa [#allocation4], 1 }
 0x140   :  { %363 = vsyncpa [#allocation4 + $0x1], 1 }
 0x141   :  { %364 = vsyncpa [#allocation5], 1 }
 0x142   :  { %366 = vsyncpa [#allocation5 + $0x1], 1 }
 0x143   :  { %367 = vsyncpa [#allocation6], 1 }
 0x144   :  { %369 = vsyncpa [#allocation6 + $0x1], 1 }

</bundles_post_ra>
